<compile_context>
chip_gen: v5e
topology: v5e:2x2
jax: 0.10.0
libtpu: 0.0.40
codegen_flags: <defaults>
</compile_context>

<pallas_src>
import functools
import math

import jax
import jax.numpy as jnp
from jax.experimental import pallas as pl
from jax.experimental.pallas import tpu as pltpu


# -----------------------------------------------------------------------------
# VMEM policy: ~75% of physical per-core VMEM, capped, with a safe fallback.
# -----------------------------------------------------------------------------
@functools.lru_cache(maxsize=None)
def _vmem_limit_bytes():
    try:
        cap = getattr(pltpu.get_tpu_info(), "vmem_capacity_bytes", None)
        if cap:
            return int(max(32 << 20, min((cap * 3) // 4, 112 << 20)))
    except Exception:
        pass
    return 48 << 20  # safe on v5e/v6e (128 MiB) and v7x (64 MiB physical)


def _sublane_align(dtype):
    # 8 rows for 4-byte dtypes, 16 for bf16/fp16, 32 for int8/fp8 activations.
    return max(8, 32 // jnp.dtype(dtype).itemsize)


# -----------------------------------------------------------------------------
# Pre-LN multi-head self-attention + residual  (MultiHeadAttention sub-module)
# -----------------------------------------------------------------------------
def _attn_kernel(x_ref, gamma_ref, beta_ref, wqkv_ref, bqkv_ref, wo_ref, bo_ref,
                 o_ref, attn_sc, *, eps, heads, core_dtype):
    x = x_ref[0].astype(jnp.float32)                       # (seq, dim)
    mean = jnp.mean(x, axis=-1, keepdims=True)
    var = jnp.mean(jnp.square(x - mean), axis=-1, keepdims=True)
    xn = (x - mean) * jax.lax.rsqrt(var + eps)
    xn = xn * gamma_ref[...] + beta_ref[...]               # gamma/beta already f32

    # Fused QKV projection: one MXU call with N = 3*dim, f32 accumulation.
    qkv = jnp.dot(xn.astype(wqkv_ref.dtype), wqkv_ref[...],
                  preferred_element_type=jnp.float32) + bqkv_ref[...]

    dim = x.shape[-1]
    hd = dim // heads
    scale = 1.0 / math.sqrt(hd)

    # TODO(synk): for long sequences add q/kv grid axes with an online softmax
    # (flash-style) instead of materializing (seq, seq) scores per head.
    for h in range(heads):                                 # static unroll over heads
        qh = (qkv[:, h * hd:(h + 1) * hd] * scale).astype(core_dtype)
        kh = qkv[:, dim + h * hd:dim + (h + 1) * hd].astype(core_dtype)
        vh = qkv[:, 2 * dim + h * hd:2 * dim + (h + 1) * hd].astype(core_dtype)
        # q @ k^T by contracting the last dims: no explicit transpose, bf16
        # operands -> native MXU rate, f32 accumulation.
        s = jax.lax.dot_general(qh, kh, (((1,), (1,)), ((), ())),
                                preferred_element_type=jnp.float32)
        s = s - jnp.max(s, axis=-1, keepdims=True)
        p = jnp.exp(s)
        # softmax denominator via approx reciprocal (EUP slot, frees the VALU);
        # applied after PV so it is a (seq, hd) multiply instead of (seq, seq).
        inv = pl.reciprocal(jnp.sum(p, axis=-1, keepdims=True), approx=True)
        # TODO(synk): attention dropout is identity at inference.
        oh = jnp.dot(p.astype(core_dtype), vh, preferred_element_type=jnp.float32)
        attn_sc[:, h * hd:(h + 1) * hd] = (oh * inv).astype(attn_sc.dtype)

    # Output projection from the head-assembled scratch (single big-K matmul).
    y = jnp.dot(attn_sc[...], wo_ref[...],
                preferred_element_type=jnp.float32) + bo_ref[...]
    o_ref[0] = (x + y).astype(o_ref.dtype)                 # fused residual add


def attention_block(x, params, *, heads, eps=1e-5, core_dtype=jnp.bfloat16):
    batch, seq, dim = x.shape
    assert dim % heads == 0

    f32 = lambda a: a.astype(jnp.float32)
    gamma = f32(params["attn_gamma"]).reshape(1, dim)
    beta = f32(params["attn_beta"]).reshape(1, dim)
    # Fused QKV weight/bias: one resident buffer, one DMA, one matmul.
    wqkv = jnp.concatenate([params["wq"], params["wk"], params["wv"]], axis=1)
    bqkv = jnp.concatenate(
        [f32(params["bq"]), f32(params["bk"]), f32(params["bv"])]).reshape(1, 3 * dim)
    wo = params["wo"]
    bo = f32(params["bo"]).reshape(1, dim)

    x_spec = pl.BlockSpec((1, seq, dim), lambda b: (b, 0, 0))
    vec_spec = lambda n: pl.BlockSpec((1, n), lambda b: (0, 0))
    wqkv_spec = pl.BlockSpec((dim, 3 * dim), lambda b: (0, 0))   # resident
    wo_spec = pl.BlockSpec((dim, dim), lambda b: (0, 0))         # resident

    xi = x.dtype.itemsize
    wi = wqkv.dtype.itemsize
    cost = pl.CostEstimate(
        flops=2 * batch * seq * dim * 4 * dim + 4 * batch * seq * seq * dim,
        transcendentals=batch * heads * seq * seq,
        bytes_accessed=2 * batch * seq * dim * xi              # x in + out
                       + 4 * dim * dim * wi + 6 * dim * 4,     # wqkv + wo + biases
    )

    return pl.pallas_call(
        functools.partial(_attn_kernel, eps=eps, heads=heads, core_dtype=core_dtype),
        out_shape=jax.ShapeDtypeStruct((batch, seq, dim), x.dtype),
        grid_spec=pltpu.PrefetchScalarGridSpec(
            num_scalar_prefetch=0,
            grid=(batch,),
            in_specs=[x_spec, vec_spec(dim), vec_spec(dim),
                      wqkv_spec, vec_spec(3 * dim), wo_spec, vec_spec(dim)],
            out_specs=x_spec,
            scratch_shapes=[pltpu.VMEM((seq, dim), wo.dtype)],   # head-assembled attn
        ),
        compiler_params=pltpu.CompilerParams(
            dimension_semantics=("parallel",),
            vmem_limit_bytes=_vmem_limit_bytes()),
        cost_estimate=cost,
    )(x, gamma, beta, wqkv, bqkv, wo, bo)


# -----------------------------------------------------------------------------
# Pre-LN MLP (Linear -> GELU -> Linear) + residual  (FeedForward sub-module)
# -----------------------------------------------------------------------------
def _ffn_kernel(x_ref, gamma_ref, beta_ref, w1_ref, b1_ref, w2_ref, b2_ref,
                o_ref, xn_ref, acc_ref, *, eps):
    j = pl.program_id(1)

    @pl.when(j == 0)
    def _():
        xf = x_ref[...].astype(jnp.float32)
        mean = jnp.mean(xf, axis=-1, keepdims=True)
        var = jnp.mean(jnp.square(xf - mean), axis=-1, keepdims=True)
        xn = (xf - mean) * jax.lax.rsqrt(var + eps)
        xn_ref[...] = (xn * gamma_ref[...] + beta_ref[...]).astype(xn_ref.dtype)
        acc_ref[...] = jnp.zeros_like(acc_ref)

    # Linear(dim -> mlp tile): weight-native operands, f32 accumulation.
    h = jnp.dot(xn_ref[...], w1_ref[...],
                preferred_element_type=jnp.float32) + b1_ref[...]
    # Exact GELU (matches torch.nn.GELU, approximate='none').
    h = 0.5 * h * (1.0 + jax.lax.erf(h * (1.0 / math.sqrt(2.0))))
    # TODO(synk): dropout is identity at inference.
    # Linear(mlp tile -> dim), accumulated over mlp tiles in f32.
    acc_ref[...] += jnp.dot(h.astype(w2_ref.dtype), w2_ref[...],
                            preferred_element_type=jnp.float32)

    @pl.when(j == pl.num_programs(1) - 1)
    def _():
        y = acc_ref[...] + b2_ref[...] + x_ref[...].astype(jnp.float32)
        o_ref[...] = y.astype(o_ref.dtype)                 # fused residual add


def _pick_ffn_tiles(tokens, dim, mlp_dim, x_dtype, w_dtype, vmem_limit):
    row_align = _sublane_align(x_dtype)
    xi = jnp.dtype(x_dtype).itemsize
    wi = jnp.dtype(w_dtype).itemsize

    def vmem_est(rows, tm):
        return (2 * 2 * rows * dim * xi              # x & out tiles (double buffered)
                + 2 * 2 * dim * tm * wi              # w1 & w2 (double buffered)
                + rows * tm * 4                      # h intermediate (f32)
                + rows * dim * (wi + 4)              # xn + acc scratch
                + 2 * (tm + 3 * dim) * 4)            # biases / LN params

    budget = int(vmem_limit * 0.9)

    # mlp tile: keep w1/w2 fully resident when they fit (the right trade on
    # v5e/v6e HBM bandwidth); only tile mlp_dim in 128-multiples when forced
    # (v7x, 64 MiB VMEM).
    tile_mlp = mlp_dim
    if vmem_est(row_align, tile_mlp) > budget and mlp_dim % 128 == 0:
        divisors = [c for c in range(128, mlp_dim, 128) if mlp_dim % c == 0]
        fitting = [c for c in divisors if vmem_est(row_align, c) <= budget]
        if fitting:
            tile_mlp = max(fitting)
        elif divisors:
            tile_mlp = min(divisors)
        # TODO(synk): if even tile_mlp=128 does not fit, also tile `dim`.

    # token tile: biggest that fits (fewer ~0.35us grid steps, bigger MXU M).
    max_rows = pl.cdiv(tokens, row_align) * row_align
    block_rows = row_align
    for cand in (1024, 512, 256, 128, 64, 32, 16, 8):
        if cand % row_align or cand > max(max_rows, row_align):
            continue
        if vmem_est(cand, tile_mlp) <= budget:
            block_rows = cand
            break
    return block_rows, tile_mlp


def feed_forward_block(x, params, *, eps=1e-5, block_rows=None):
    batch, seq, dim = x.shape
    w1 = params["w1"]                                      # (dim, mlp_dim)
    w2 = params["w2"]                                      # (mlp_dim, dim)
    mlp_dim = w1.shape[1]
    tokens = batch * seq

    vmem_limit = _vmem_limit_bytes()
    row_align = _sublane_align(x.dtype)
    auto_rows, tile_mlp = _pick_ffn_tiles(tokens, dim, mlp_dim, x.dtype,
                                          w1.dtype, vmem_limit)
    if block_rows is None:
        block_rows = auto_rows
    else:
        block_rows = max(row_align, (block_rows // row_align) * row_align)
        block_rows = min(block_rows, pl.cdiv(tokens, row_align) * row_align)
    padded_tokens = pl.cdiv(tokens, block_rows) * block_rows
    num_mlp_tiles = mlp_dim // tile_mlp

    x2d = x.reshape(tokens, dim)
    if padded_tokens != tokens:
        x2d = jnp.pad(x2d, ((0, padded_tokens - tokens), (0, 0)))

    f32 = lambda a: a.astype(jnp.float32)
    gamma = f32(params["ffn_gamma"]).reshape(1, dim)
    beta = f32(params["ffn_beta"]).reshape(1, dim)
    b1 = f32(params["b1"]).reshape(1, mlp_dim)
    b2 = f32(params["b2"]).reshape(1, dim)

    grid = (padded_tokens // block_rows, num_mlp_tiles)
    xi = x.dtype.itemsize
    wi = w1.dtype.itemsize
    weight_reads = 1 if num_mlp_tiles == 1 else grid[0]
    cost = pl.CostEstimate(
        flops=4 * padded_tokens * dim * mlp_dim,
        transcendentals=padded_tokens * mlp_dim,
        bytes_accessed=2 * padded_tokens * dim * xi
                       + 2 * dim * mlp_dim * wi * weight_reads
                       + (mlp_dim + 3 * dim) * 4,
    )

    out = pl.pallas_call(
        functools.partial(_ffn_kernel, eps=eps),
        out_shape=jax.ShapeDtypeStruct((padded_tokens, dim), x.dtype),
        grid_spec=pltpu.PrefetchScalarGridSpec(
            num_scalar_prefetch=0,
            grid=grid,
            in_specs=[
                pl.BlockSpec((block_rows, dim), lambda i, j: (i, 0)),   # x tile
                pl.BlockSpec((1, dim), lambda i, j: (0, 0)),            # gamma (f32)
                pl.BlockSpec((1, dim), lambda i, j: (0, 0)),            # beta  (f32)
                pl.BlockSpec((dim, tile_mlp), lambda i, j: (0, j)),     # w1 tile
                pl.BlockSpec((1, tile_mlp), lambda i, j: (0, j)),       # b1 (f32)
                pl.BlockSpec((tile_mlp, dim), lambda i, j: (j, 0)),     # w2 tile
                pl.BlockSpec((1, dim), lambda i, j: (0, 0)),            # b2 (f32)
            ],
            out_specs=pl.BlockSpec((block_rows, dim), lambda i, j: (i, 0)),
            scratch_shapes=[pltpu.VMEM((block_rows, dim), w1.dtype),     # LN(x)
                            pltpu.VMEM((block_rows, dim), jnp.float32)], # f32 acc
        ),
        compiler_params=pltpu.CompilerParams(
            dimension_semantics=("parallel", "arbitrary"),
            vmem_limit_bytes=vmem_limit),
        cost_estimate=cost,
    )(x2d, gamma, beta, w1, b1, w2, b2)
    return out[:tokens].reshape(batch, seq, dim)


# -----------------------------------------------------------------------------
# TransformerBlock: x = x + MHA(LN(x)); x = x + MLP(LN(x))
# -----------------------------------------------------------------------------
def transformer_block(x, params, *, heads, eps=1e-5, core_dtype=jnp.bfloat16,
                      ffn_block_rows=None):
    x = attention_block(x, params, heads=heads, eps=eps, core_dtype=core_dtype)
    x = feed_forward_block(x, params, eps=eps, block_rows=ffn_block_rows)
    return x


# -----------------------------------------------------------------------------
# Pure-JAX reference
# -----------------------------------------------------------------------------
def _reference(x, params, heads, eps=1e-5):
    def layernorm(t, g, b):
        m = jnp.mean(t, axis=-1, keepdims=True)
        v = jnp.mean(jnp.square(t - m), axis=-1, keepdims=True)
        return (t - m) * jax.lax.rsqrt(v + eps) * g + b

    xf = x.astype(jnp.float32)
    B, S, D = x.shape
    hd = D // heads

    xn = layernorm(xf, params["attn_gamma"], params["attn_beta"])
    q = xn @ params["wq"] + params["bq"]
    k = xn @ params["wk"] + params["bk"]
    v = xn @ params["wv"] + params["bv"]
    q = q.reshape(B, S, heads, hd).transpose(0, 2, 1, 3)
    k = k.reshape(B, S, heads, hd).transpose(0, 2, 1, 3)
    v = v.reshape(B, S, heads, hd).transpose(0, 2, 1, 3)
    s = jnp.einsum("bhqd,bhkd->bhqk", q, k) / math.sqrt(hd)
    p = jax.nn.softmax(s, axis=-1)
    o = jnp.einsum("bhqk,bhkd->bhqd", p, v).transpose(0, 2, 1, 3).reshape(B, S, D)
    o = o @ params["wo"] + params["bo"]
    x1 = xf + o

    xn = layernorm(x1, params["ffn_gamma"], params["ffn_beta"])
    h = xn @ params["w1"] + params["b1"]
    h = 0.5 * h * (1.0 + jax.lax.erf(h / math.sqrt(2.0)))
    y = h @ params["w2"] + params["b2"]
    return (x1 + y).astype(x.dtype)


if __name__ == "__main__":
    # config = {'dim': 32, 'mlp_dim': 64, 'heads': 4, 'dropout': 0.0}
    batch, seq, dim, mlp_dim, heads = 2, 8, 32, 64, 4

    key = jax.random.PRNGKey(0)
    keys = jax.random.split(key, 12)

    x = jax.random.normal(keys[0], (batch, seq, dim), dtype=jnp.float32)
    params = {
        "attn_gamma": jnp.ones((dim,), jnp.float32),
        "attn_beta": jnp.zeros((dim,), jnp.float32),
        "wq": jax.random.normal(keys[1], (dim, dim), jnp.float32) * 0.1,
        "bq": jax.random.normal(keys[2], (dim,), jnp.float32) * 0.01,
        "wk": jax.random.normal(keys[3], (dim, dim), jnp.float32) * 0.1,
        "bk": jax.random.normal(keys[4], (dim,), jnp.float32) * 0.01,
        "wv": jax.random.normal(keys[5], (dim, dim), jnp.float32) * 0.1,
        "bv": jax.random.normal(keys[6], (dim,), jnp.float32) * 0.01,
        "wo": jax.random.normal(keys[7], (dim, dim), jnp.float32) * 0.1,
        "bo": jax.random.normal(keys[8], (dim,), jnp.float32) * 0.01,
        "ffn_gamma": jnp.ones((dim,), jnp.float32),
        "ffn_beta": jnp.zeros((dim,), jnp.float32),
        "w1": jax.random.normal(keys[9], (dim, mlp_dim), jnp.float32) * 0.05,
        "b1": jax.random.normal(keys[10], (mlp_dim,), jnp.float32) * 0.01,
        "w2": jax.random.normal(keys[11], (mlp_dim, dim), jnp.float32) * 0.05,
        "b2": jnp.zeros((dim,), jnp.float32),
    }

    out = transformer_block(x, params, heads=heads)
    out = jax.block_until_ready(out)

    ref = _reference(x, params, heads)
    assert out.shape == ref.shape
    # bf16 attention-core matmuls + approx reciprocal -> slightly looser tolerance.
    assert jnp.allclose(out, ref, atol=2e-2, rtol=2e-2), "mismatch vs reference"
    print("KERNEL_OK")
</pallas_src>

<mosaic_0001>
module attributes {stable_mosaic.version = 11 : i64} {
  func.func @_attn_kernel(%arg0: i32, %arg1: memref<1x8x32xf32, #tpu.memory_space<vmem>>, %arg2: memref<1x32xf32, #tpu.memory_space<vmem>>, %arg3: memref<1x32xf32, #tpu.memory_space<vmem>>, %arg4: memref<32x96xf32, #tpu.memory_space<vmem>>, %arg5: memref<1x96xf32, #tpu.memory_space<vmem>>, %arg6: memref<32x32xf32, #tpu.memory_space<vmem>>, %arg7: memref<1x32xf32, #tpu.memory_space<vmem>>, %arg8: memref<1x8x32xf32, #tpu.memory_space<vmem>>, %arg9: memref<8x32xf32, #tpu.memory_space<vmem>>) attributes {dimension_semantics = [#tpu.dimension_semantics<parallel>], iteration_bounds = array<i64: 2>, scalar_prefetch = 0 : i64, scratch_operands = 1 : i64, tpu.core_type = #tpu.core_type<tc>, window_params = [{transform_indices = @transform_0, window_bounds = array<i64: 1, 8, 32>}, {pipeline_mode = #tpu.pipeline_mode<synchronous>, transform_indices = @transform_1, window_bounds = array<i64: 1, 32>}, {pipeline_mode = #tpu.pipeline_mode<synchronous>, transform_indices = @transform_2, window_bounds = array<i64: 1, 32>}, {pipeline_mode = #tpu.pipeline_mode<synchronous>, transform_indices = @transform_3, window_bounds = array<i64: 32, 96>}, {pipeline_mode = #tpu.pipeline_mode<synchronous>, transform_indices = @transform_4, window_bounds = array<i64: 1, 96>}, {pipeline_mode = #tpu.pipeline_mode<synchronous>, transform_indices = @transform_5, window_bounds = array<i64: 32, 32>}, {pipeline_mode = #tpu.pipeline_mode<synchronous>, transform_indices = @transform_6, window_bounds = array<i64: 1, 32>}, {transform_indices = @transform_7, window_bounds = array<i64: 1, 8, 32>}]} {
    %c0 = arith.constant 0 : index
    %c0_0 = arith.constant 0 : index
    %c0_1 = arith.constant 0 : index
    %0 = vector.load %arg1[%c0, %c0_0, %c0_1] : memref<1x8x32xf32, #tpu.memory_space<vmem>>, vector<1x8x32xf32>
    %1 = vector.shape_cast %0 : vector<1x8x32xf32> to vector<8x32xf32>
    %cst = arith.constant dense<0.000000e+00> : vector<8xf32>
    %2 = vector.multi_reduction <add>, %1, %cst [1] : vector<8x32xf32> to vector<8xf32>
    %3 = vector.shape_cast %2 : vector<8xf32> to vector<8x1xf32>
    %cst_2 = arith.constant 3.200000e+01 : f32
    %4 = vector.broadcast %cst_2 : f32 to vector<8x1xf32>
    %5 = arith.divf %3, %4 : vector<8x1xf32>
    %6 = vector.broadcast %5 : vector<8x1xf32> to vector<8x32xf32>
    %7 = arith.subf %1, %6 : vector<8x32xf32>
    %8 = arith.mulf %7, %7 : vector<8x32xf32>
    %cst_3 = arith.constant dense<0.000000e+00> : vector<8xf32>
    %9 = vector.multi_reduction <add>, %8, %cst_3 [1] : vector<8x32xf32> to vector<8xf32>
    %10 = vector.shape_cast %9 : vector<8xf32> to vector<8x1xf32>
    %cst_4 = arith.constant 3.200000e+01 : f32
    %11 = vector.broadcast %cst_4 : f32 to vector<8x1xf32>
    %12 = arith.divf %10, %11 : vector<8x1xf32>
    %13 = vector.broadcast %5 : vector<8x1xf32> to vector<8x32xf32>
    %14 = arith.subf %1, %13 : vector<8x32xf32>
    %cst_5 = arith.constant 9.99999974E-6 : f32
    %15 = vector.broadcast %cst_5 : f32 to vector<8x1xf32>
    %16 = arith.addf %12, %15 : vector<8x1xf32>
    %17 = math.rsqrt %16 : vector<8x1xf32>
    %18 = vector.broadcast %17 : vector<8x1xf32> to vector<8x32xf32>
    %19 = arith.mulf %14, %18 : vector<8x32xf32>
    %c0_6 = arith.constant 0 : index
    %c0_7 = arith.constant 0 : index
    %20 = vector.load %arg2[%c0_6, %c0_7] : memref<1x32xf32, #tpu.memory_space<vmem>>, vector<1x32xf32>
    %21 = vector.broadcast %20 : vector<1x32xf32> to vector<8x32xf32>
    %22 = arith.mulf %19, %21 : vector<8x32xf32>
    %c0_8 = arith.constant 0 : index
    %c0_9 = arith.constant 0 : index
    %23 = vector.load %arg3[%c0_8, %c0_9] : memref<1x32xf32, #tpu.memory_space<vmem>>, vector<1x32xf32>
    %24 = vector.broadcast %23 : vector<1x32xf32> to vector<8x32xf32>
    %25 = arith.addf %22, %24 : vector<8x32xf32>
    %c0_10 = arith.constant 0 : index
    %c0_11 = arith.constant 0 : index
    %26 = vector.load %arg4[%c0_10, %c0_11] : memref<32x96xf32, #tpu.memory_space<vmem>>, vector<32x96xf32>
    %cst_12 = arith.constant dense<0.000000e+00> : vector<8x96xf32>
    %27 = tpu.matmul %25, %26, %cst_12 {dimension_numbers = #tpu.dot_dimension_numbers<[1], [0], [0], [1], [0, 0, 1, 1], [], []>} : vector<8x32xf32>, vector<32x96xf32>, vector<8x96xf32> -> vector<8x96xf32>
    %c0_13 = arith.constant 0 : index
    %c0_14 = arith.constant 0 : index
    %28 = vector.load %arg5[%c0_13, %c0_14] : memref<1x96xf32, #tpu.memory_space<vmem>>, vector<1x96xf32>
    %29 = vector.broadcast %28 : vector<1x96xf32> to vector<8x96xf32>
    %30 = arith.addf %27, %29 : vector<8x96xf32>
    %31 = vector.extract_strided_slice %30 {offsets = [0, 0], sizes = [8, 8], strides = [1, 1]} : vector<8x96xf32> to vector<8x8xf32>
    %cst_15 = arith.constant 0.353553385 : f32
    %32 = vector.broadcast %cst_15 : f32 to vector<8x8xf32>
    %33 = arith.mulf %31, %32 : vector<8x8xf32>
    %34 = arith.truncf %33 : vector<8x8xf32> to vector<8x8xbf16>
    %35 = vector.extract_strided_slice %30 {offsets = [0, 32], sizes = [8, 8], strides = [1, 1]} : vector<8x96xf32> to vector<8x8xf32>
    %36 = arith.truncf %35 : vector<8x8xf32> to vector<8x8xbf16>
    %37 = vector.extract_strided_slice %30 {offsets = [0, 64], sizes = [8, 8], strides = [1, 1]} : vector<8x96xf32> to vector<8x8xf32>
    %38 = arith.truncf %37 : vector<8x8xf32> to vector<8x8xbf16>
    %cst_16 = arith.constant dense<0.000000e+00> : vector<8x8xf32>
    %39 = tpu.matmul %34, %36, %cst_16 {dimension_numbers = #tpu.dot_dimension_numbers<[1], [1], [0], [0], [0, 0, 1, 0], [], []>} : vector<8x8xbf16>, vector<8x8xbf16>, vector<8x8xf32> -> vector<8x8xf32>
    %cst_17 = arith.constant dense<0xFF800000> : vector<8xf32>
    %40 = vector.multi_reduction <maximumf>, %39, %cst_17 [1] : vector<8x8xf32> to vector<8xf32>
    %41 = vector.shape_cast %40 : vector<8xf32> to vector<8x1xf32>
    %42 = vector.broadcast %41 : vector<8x1xf32> to vector<8x8xf32>
    %43 = arith.subf %39, %42 : vector<8x8xf32>
    %44 = math.exp %43 : vector<8x8xf32>
    %cst_18 = arith.constant dense<0.000000e+00> : vector<8xf32>
    %45 = vector.multi_reduction <add>, %44, %cst_18 [1] : vector<8x8xf32> to vector<8xf32>
    %46 = vector.shape_cast %45 : vector<8xf32> to vector<8x1xf32>
    %47 = tpu.reciprocal %46 {approx = true} : vector<8x1xf32> -> vector<8x1xf32>
    %48 = arith.truncf %44 : vector<8x8xf32> to vector<8x8xbf16>
    %cst_19 = arith.constant dense<0.000000e+00> : vector<8x8xf32>
    %49 = tpu.matmul %48, %38, %cst_19 {dimension_numbers = #tpu.dot_dimension_numbers<[1], [0], [0], [1], [0, 0, 1, 1], [], []>} : vector<8x8xbf16>, vector<8x8xbf16>, vector<8x8xf32> -> vector<8x8xf32>
    %50 = vector.broadcast %47 : vector<8x1xf32> to vector<8x8xf32>
    %51 = arith.mulf %49, %50 : vector<8x8xf32>
    %c0_20 = arith.constant 0 : index
    %c0_21 = arith.constant 0 : index
    %52 = vector.load %arg9[%c0_20, %c0_21] : memref<8x32xf32, #tpu.memory_space<vmem>>, vector<8x8xf32>
    tpu.vector_store %arg9[%c0_20, %c0_21], %51 {strides = array<i32>} : memref<8x32xf32, #tpu.memory_space<vmem>>, vector<8x8xf32>,
    %53 = vector.extract_strided_slice %30 {offsets = [0, 8], sizes = [8, 8], strides = [1, 1]} : vector<8x96xf32> to vector<8x8xf32>
    %cst_22 = arith.constant 0.353553385 : f32
    %54 = vector.broadcast %cst_22 : f32 to vector<8x8xf32>
    %55 = arith.mulf %53, %54 : vector<8x8xf32>
    %56 = arith.truncf %55 : vector<8x8xf32> to vector<8x8xbf16>
    %57 = vector.extract_strided_slice %30 {offsets = [0, 40], sizes = [8, 8], strides = [1, 1]} : vector<8x96xf32> to vector<8x8xf32>
    %58 = arith.truncf %57 : vector<8x8xf32> to vector<8x8xbf16>
    %59 = vector.extract_strided_slice %30 {offsets = [0, 72], sizes = [8, 8], strides = [1, 1]} : vector<8x96xf32> to vector<8x8xf32>
    %60 = arith.truncf %59 : vector<8x8xf32> to vector<8x8xbf16>
    %cst_23 = arith.constant dense<0.000000e+00> : vector<8x8xf32>
    %61 = tpu.matmul %56, %58, %cst_23 {dimension_numbers = #tpu.dot_dimension_numbers<[1], [1], [0], [0], [0, 0, 1, 0], [], []>} : vector<8x8xbf16>, vector<8x8xbf16>, vector<8x8xf32> -> vector<8x8xf32>
    %cst_24 = arith.constant dense<0xFF800000> : vector<8xf32>
    %62 = vector.multi_reduction <maximumf>, %61, %cst_24 [1] : vector<8x8xf32> to vector<8xf32>
    %63 = vector.shape_cast %62 : vector<8xf32> to vector<8x1xf32>
    %64 = vector.broadcast %63 : vector<8x1xf32> to vector<8x8xf32>
    %65 = arith.subf %61, %64 : vector<8x8xf32>
    %66 = math.exp %65 : vector<8x8xf32>
    %cst_25 = arith.constant dense<0.000000e+00> : vector<8xf32>
    %67 = vector.multi_reduction <add>, %66, %cst_25 [1] : vector<8x8xf32> to vector<8xf32>
    %68 = vector.shape_cast %67 : vector<8xf32> to vector<8x1xf32>
    %69 = tpu.reciprocal %68 {approx = true} : vector<8x1xf32> -> vector<8x1xf32>
    %70 = arith.truncf %66 : vector<8x8xf32> to vector<8x8xbf16>
    %cst_26 = arith.constant dense<0.000000e+00> : vector<8x8xf32>
    %71 = tpu.matmul %70, %60, %cst_26 {dimension_numbers = #tpu.dot_dimension_numbers<[1], [0], [0], [1], [0, 0, 1, 1], [], []>} : vector<8x8xbf16>, vector<8x8xbf16>, vector<8x8xf32> -> vector<8x8xf32>
    %72 = vector.broadcast %69 : vector<8x1xf32> to vector<8x8xf32>
    %73 = arith.mulf %71, %72 : vector<8x8xf32>
    %c0_27 = arith.constant 0 : index
    %c8 = arith.constant 8 : index
    %74 = vector.load %arg9[%c0_27, %c8] : memref<8x32xf32, #tpu.memory_space<vmem>>, vector<8x8xf32>
    tpu.vector_store %arg9[%c0_27, %c8], %73 {strides = array<i32>} : memref<8x32xf32, #tpu.memory_space<vmem>>, vector<8x8xf32>,
    %75 = vector.extract_strided_slice %30 {offsets = [0, 16], sizes = [8, 8], strides = [1, 1]} : vector<8x96xf32> to vector<8x8xf32>
    %cst_28 = arith.constant 0.353553385 : f32
    %76 = vector.broadcast %cst_28 : f32 to vector<8x8xf32>
    %77 = arith.mulf %75, %76 : vector<8x8xf32>
    %78 = arith.truncf %77 : vector<8x8xf32> to vector<8x8xbf16>
    %79 = vector.extract_strided_slice %30 {offsets = [0, 48], sizes = [8, 8], strides = [1, 1]} : vector<8x96xf32> to vector<8x8xf32>
    %80 = arith.truncf %79 : vector<8x8xf32> to vector<8x8xbf16>
    %81 = vector.extract_strided_slice %30 {offsets = [0, 80], sizes = [8, 8], strides = [1, 1]} : vector<8x96xf32> to vector<8x8xf32>
    %82 = arith.truncf %81 : vector<8x8xf32> to vector<8x8xbf16>
    %cst_29 = arith.constant dense<0.000000e+00> : vector<8x8xf32>
    %83 = tpu.matmul %78, %80, %cst_29 {dimension_numbers = #tpu.dot_dimension_numbers<[1], [1], [0], [0], [0, 0, 1, 0], [], []>} : vector<8x8xbf16>, vector<8x8xbf16>, vector<8x8xf32> -> vector<8x8xf32>
    %cst_30 = arith.constant dense<0xFF800000> : vector<8xf32>
    %84 = vector.multi_reduction <maximumf>, %83, %cst_30 [1] : vector<8x8xf32> to vector<8xf32>
    %85 = vector.shape_cast %84 : vector<8xf32> to vector<8x1xf32>
    %86 = vector.broadcast %85 : vector<8x1xf32> to vector<8x8xf32>
    %87 = arith.subf %83, %86 : vector<8x8xf32>
    %88 = math.exp %87 : vector<8x8xf32>
    %cst_31 = arith.constant dense<0.000000e+00> : vector<8xf32>
    %89 = vector.multi_reduction <add>, %88, %cst_31 [1] : vector<8x8xf32> to vector<8xf32>
    %90 = vector.shape_cast %89 : vector<8xf32> to vector<8x1xf32>
    %91 = tpu.reciprocal %90 {approx = true} : vector<8x1xf32> -> vector<8x1xf32>
    %92 = arith.truncf %88 : vector<8x8xf32> to vector<8x8xbf16>
    %cst_32 = arith.constant dense<0.000000e+00> : vector<8x8xf32>
    %93 = tpu.matmul %92, %82, %cst_32 {dimension_numbers = #tpu.dot_dimension_numbers<[1], [0], [0], [1], [0, 0, 1, 1], [], []>} : vector<8x8xbf16>, vector<8x8xbf16>, vector<8x8xf32> -> vector<8x8xf32>
    %94 = vector.broadcast %91 : vector<8x1xf32> to vector<8x8xf32>
    %95 = arith.mulf %93, %94 : vector<8x8xf32>
    %c0_33 = arith.constant 0 : index
    %c16 = arith.constant 16 : index
    %96 = vector.load %arg9[%c0_33, %c16] : memref<8x32xf32, #tpu.memory_space<vmem>>, vector<8x8xf32>
    tpu.vector_store %arg9[%c0_33, %c16], %95 {strides = array<i32>} : memref<8x32xf32, #tpu.memory_space<vmem>>, vector<8x8xf32>,
    %97 = vector.extract_strided_slice %30 {offsets = [0, 24], sizes = [8, 8], strides = [1, 1]} : vector<8x96xf32> to vector<8x8xf32>
    %cst_34 = arith.constant 0.353553385 : f32
    %98 = vector.broadcast %cst_34 : f32 to vector<8x8xf32>
    %99 = arith.mulf %97, %98 : vector<8x8xf32>
    %100 = arith.truncf %99 : vector<8x8xf32> to vector<8x8xbf16>
    %101 = vector.extract_strided_slice %30 {offsets = [0, 56], sizes = [8, 8], strides = [1, 1]} : vector<8x96xf32> to vector<8x8xf32>
    %102 = arith.truncf %101 : vector<8x8xf32> to vector<8x8xbf16>
    %103 = vector.extract_strided_slice %30 {offsets = [0, 88], sizes = [8, 8], strides = [1, 1]} : vector<8x96xf32> to vector<8x8xf32>
    %104 = arith.truncf %103 : vector<8x8xf32> to vector<8x8xbf16>
    %cst_35 = arith.constant dense<0.000000e+00> : vector<8x8xf32>
    %105 = tpu.matmul %100, %102, %cst_35 {dimension_numbers = #tpu.dot_dimension_numbers<[1], [1], [0], [0], [0, 0, 1, 0], [], []>} : vector<8x8xbf16>, vector<8x8xbf16>, vector<8x8xf32> -> vector<8x8xf32>
    %cst_36 = arith.constant dense<0xFF800000> : vector<8xf32>
    %106 = vector.multi_reduction <maximumf>, %105, %cst_36 [1] : vector<8x8xf32> to vector<8xf32>
    %107 = vector.shape_cast %106 : vector<8xf32> to vector<8x1xf32>
    %108 = vector.broadcast %107 : vector<8x1xf32> to vector<8x8xf32>
    %109 = arith.subf %105, %108 : vector<8x8xf32>
    %110 = math.exp %109 : vector<8x8xf32>
    %cst_37 = arith.constant dense<0.000000e+00> : vector<8xf32>
    %111 = vector.multi_reduction <add>, %110, %cst_37 [1] : vector<8x8xf32> to vector<8xf32>
    %112 = vector.shape_cast %111 : vector<8xf32> to vector<8x1xf32>
    %113 = tpu.reciprocal %112 {approx = true} : vector<8x1xf32> -> vector<8x1xf32>
    %114 = arith.truncf %110 : vector<8x8xf32> to vector<8x8xbf16>
    %cst_38 = arith.constant dense<0.000000e+00> : vector<8x8xf32>
    %115 = tpu.matmul %114, %104, %cst_38 {dimension_numbers = #tpu.dot_dimension_numbers<[1], [0], [0], [1], [0, 0, 1, 1], [], []>} : vector<8x8xbf16>, vector<8x8xbf16>, vector<8x8xf32> -> vector<8x8xf32>
    %116 = vector.broadcast %113 : vector<8x1xf32> to vector<8x8xf32>
    %117 = arith.mulf %115, %116 : vector<8x8xf32>
    %c0_39 = arith.constant 0 : index
    %c24 = arith.constant 24 : index
    %118 = vector.load %arg9[%c0_39, %c24] : memref<8x32xf32, #tpu.memory_space<vmem>>, vector<8x8xf32>
    tpu.vector_store %arg9[%c0_39, %c24], %117 {strides = array<i32>} : memref<8x32xf32, #tpu.memory_space<vmem>>, vector<8x8xf32>,
    %c0_40 = arith.constant 0 : index
    %c0_41 = arith.constant 0 : index
    %119 = vector.load %arg9[%c0_40, %c0_41] : memref<8x32xf32, #tpu.memory_space<vmem>>, vector<8x32xf32>
    %c0_42 = arith.constant 0 : index
    %c0_43 = arith.constant 0 : index
    %120 = vector.load %arg6[%c0_42, %c0_43] : memref<32x32xf32, #tpu.memory_space<vmem>>, vector<32x32xf32>
    %cst_44 = arith.constant dense<0.000000e+00> : vector<8x32xf32>
    %121 = tpu.matmul %119, %120, %cst_44 {dimension_numbers = #tpu.dot_dimension_numbers<[1], [0], [0], [1], [0, 0, 1, 1], [], []>} : vector<8x32xf32>, vector<32x32xf32>, vector<8x32xf32> -> vector<8x32xf32>
    %c0_45 = arith.constant 0 : index
    %c0_46 = arith.constant 0 : index
    %122 = vector.load %arg7[%c0_45, %c0_46] : memref<1x32xf32, #tpu.memory_space<vmem>>, vector<1x32xf32>
    %123 = vector.broadcast %122 : vector<1x32xf32> to vector<8x32xf32>
    %124 = arith.addf %121, %123 : vector<8x32xf32>
    %125 = arith.addf %1, %124 : vector<8x32xf32>
    %c0_47 = arith.constant 0 : index
    %c0_48 = arith.constant 0 : index
    %c0_49 = arith.constant 0 : index
    %126 = vector.load %arg8[%c0_47, %c0_48, %c0_49] : memref<1x8x32xf32, #tpu.memory_space<vmem>>, vector<1x8x32xf32>
    %127 = vector.shape_cast %126 : vector<1x8x32xf32> to vector<8x32xf32>
    %128 = vector.shape_cast %125 : vector<8x32xf32> to vector<1x8x32xf32>
    tpu.vector_store %arg8[%c0_47, %c0_48, %c0_49], %128 {strides = array<i32>} : memref<1x8x32xf32, #tpu.memory_space<vmem>>, vector<1x8x32xf32>,
    return
  }
  func.func @transform_0(%arg0: i32) -> (i32, i32, i32) {
    %c0_i32 = arith.constant 0 : i32
    %c0_i32_0 = arith.constant 0 : i32
    %c0_i32_1 = arith.constant 0 : i32
    return %arg0, %c0_i32, %c0_i32_0 : i32, i32, i32
  }
  func.func @transform_1(%arg0: i32) -> (i32, i32) {
    %c0_i32 = arith.constant 0 : i32
    %c0_i32_0 = arith.constant 0 : i32
    %c0_i32_1 = arith.constant 0 : i32
    return %c0_i32, %c0_i32_0 : i32, i32
  }
  func.func @transform_2(%arg0: i32) -> (i32, i32) {
    %c0_i32 = arith.constant 0 : i32
    %c0_i32_0 = arith.constant 0 : i32
    %c0_i32_1 = arith.constant 0 : i32
    return %c0_i32, %c0_i32_0 : i32, i32
  }
  func.func @transform_3(%arg0: i32) -> (i32, i32) {
    %c0_i32 = arith.constant 0 : i32
    %c0_i32_0 = arith.constant 0 : i32
    %c0_i32_1 = arith.constant 0 : i32
    return %c0_i32, %c0_i32_0 : i32, i32
  }
  func.func @transform_4(%arg0: i32) -> (i32, i32) {
    %c0_i32 = arith.constant 0 : i32
    %c0_i32_0 = arith.constant 0 : i32
    %c0_i32_1 = arith.constant 0 : i32
    return %c0_i32, %c0_i32_0 : i32, i32
  }
  func.func @transform_5(%arg0: i32) -> (i32, i32) {
    %c0_i32 = arith.constant 0 : i32
    %c0_i32_0 = arith.constant 0 : i32
    %c0_i32_1 = arith.constant 0 : i32
    return %c0_i32, %c0_i32_0 : i32, i32
  }
  func.func @transform_6(%arg0: i32) -> (i32, i32) {
    %c0_i32 = arith.constant 0 : i32
    %c0_i32_0 = arith.constant 0 : i32
    %c0_i32_1 = arith.constant 0 : i32
    return %c0_i32, %c0_i32_0 : i32, i32
  }
  func.func @transform_7(%arg0: i32) -> (i32, i32, i32) {
    %c0_i32 = arith.constant 0 : i32
    %c0_i32_0 = arith.constant 0 : i32
    %c0_i32_1 = arith.constant 0 : i32
    return %arg0, %c0_i32, %c0_i32_0 : i32, i32, i32
  }
}

</mosaic_0001>

<bundles_post_ra>
// kernel: tpu_custom_call.1
= control target key start
LH: loop header
LB: loop body
LE: loop exit
PB: predicated region body
PF: predicated region fallthrough
CT: control target
= control target key end

     0   :  { %s1432_s0 = inlined_call_operand.hbm [shape: f32[2,8,32], index: 0, kind: input, shape index: {}]   ;;  %s1433_s1 = inlined_call_operand.hbm [shape: f32[1,32], index: 1, kind: input, shape index: {}]   ;;  %s1434_s2 = inlined_call_operand.vmem [shape: f32[1,32], index: 2, kind: input, shape index: {}]   ;;  %s1435_s3 = inlined_call_operand.hbm [shape: f32[32,96], index: 3, kind: input, shape index: {}]   ;;  %s1436_s4 = inlined_call_operand.vmem [shape: f32[1,96], index: 4, kind: input, shape index: {}]   ;;  %s1437_s5 = inlined_call_operand.hbm [shape: f32[32,32], index: 5, kind: input, shape index: {}]   ;;  %s1438_s6 = inlined_call_operand.vmem [shape: f32[1,32], index: 6, kind: input, shape index: {}]   ;;  %s1439_s7 = inlined_call_operand.hbm [shape: f32[2,8,32], index: 7, kind: output, shape index: {}]  }
   0x1   :  { %1440 = sst [smem:[#allocation16_spill]] %s1433_s1 }
   0x2   :  { %12 = vsyncpa [#allocation4], 0 }
   0x3   :  { %14 = vsyncpa [#allocation4 + $0x1], 0 }
   0x4   :  { %15 = vsyncpa [#allocation7], 0 }
   0x5   :  { %16 = vsyncpa [#allocation10], 0 }
   0x6   :  { %17 = vsyncpa [#allocation5], 0 }
   0x7   :  { %19 = vsyncpa [#allocation5 + $0x1], 0  ;;  %s1216_s24 = smov 0   ;;  %s1218_s25 = smov 0  }
   0x8   :  { %s1220_s26 = smov 0   ;;  %s1222_s27 = smov 0  }
   0x9 LB: > { %s1237_s28 = sadd.s32 4294967295, %s1154_s27   ;;  %s814_s29 = sadd.s32 4294967294, %s1154_s27   ;;  %s1154_s27 = sphi %s1222_s27, %s1452_s27   ;;  %s1150_s26 = sphi %s1220_s26, %s1451_s26   ;;  %s1146_s25 = sphi %s1218_s25, %s1450_s25   ;;  %s1142_s24 = sphi %s1216_s24, %s1449_s24  }
   0xa   : > { %p45_p0 = scmp.ne.s32.totalorder %s1146_s25, %s1142_s24  ;;  %p46_p1 = scmp.eq.s32.totalorder %s1237_s28, 0 }
   0xb   : > { %p195_p2 = scmp.eq.s32.totalorder %s1237_s28, 1  ;;  %p201_p3 = scmp.eq.s32.totalorder %s814_s29, 1 }
   0xc   : > { %p1246_p4 = por %p46_p1, %p45_p0  ;;  %p815_p5 = scmp.ge.s32.totalorder %s1154_s27, 1 }
   0xd   : > { %p1251_p6 = por %p201_p3, %p45_p0  ;;  %p208_p7 = scmp.lt.s32.totalorder %s1154_s27, 3 }
   0xe   : > { %s1443_s1 = sld [smem:[#allocation16_spill]]  ;;  %s1156_s13 = smov [#allocation6]  }
   0xf   : > { %p1259_p8 = pnand %p815_p5, %p208_p7  ;;  %s222_s14 = sshll.u32 %s1156_s13, 4  ;;  %s223_s14 = int_to_ptr.vmem [resolvable:$true] %s222_s14 }
  0x10   : > { %s234_s17 = sshll.u32 %s1435_s3, 4  ;;  %s1157_s19 = smov [#allocation8]   ;;  %s235_s17 = int_to_ptr.hbm [resolvable:$true] %s234_s17 }
  0x11   : > { %p858_p10 = pneg %p1259_p8  ;;  %s236_s20 = sshll.u32 %s1157_s19, 4  ;;  %s237_s20 = int_to_ptr.vmem [resolvable:$true] %s236_s20 }
  0x12   : > { %s1158_s21 = smov 128   ;;  %s1159_s22 = smov 8  }
  0x13   : > { %p1271_p11 = pnand %p858_p10, %p46_p1  ;;  %s251_s9 = sshll.u32 %s1437_s5, 4  ;;  %s252_s9 = int_to_ptr.hbm [resolvable:$true] %s251_s9 }
  0x14   : > { %s220_s11 = sshll.u32 %s1443_s1, 4  ;;  %s1160_s10 = smov [#allocation9]   ;;  %s221_s11 = int_to_ptr.hbm [resolvable:$true] %s220_s11 }
  0x15   : > { %861 = dma.hbm_to_vmem [thread:$0]  (!%p1271_p11), %s221_s11, 16, %s223_s14, [#allocation7]  }
  0x16   : > { %864 = dma.hbm_to_vmem [thread:$0]  (!%p1271_p11), %s235_s17, 512, %s237_s20, [#allocation7], %s1158_s21, %s1158_s21, %s1159_s22  }
  0x17   : > { %s253_s13 = sshll.u32 %s1160_s10, 4  ;;  %s1285_s11 = sadd.s32 1, %s1154_s27   ;;  %s254_s13 = int_to_ptr.vmem [resolvable:$true] %s253_s13 }
  0x18   : > { %867 = dma.hbm_to_vmem [thread:$0]  (!%p1271_p11), %s252_s9, 512, %s254_s13, [#allocation10], %s1158_s21, %s1158_s21, %s1159_s22  }
  0x19   : > { %s29_s14 = ssub.s32 %s1154_s27, %s1285_s11  ;;  %s32_s15 = sadd.s32 1, %s1150_s26 }
  0x1a   : > { %p30_p12 = scmp.eq.s32.totalorder %s29_s14, 0  ;;  %p39_p13 = scmp.ne.s32.totalorder %s1150_s26, %s1146_s25 }
  0x1b   : > { %p40_p0 = scmp.eq.s32.totalorder %s1154_s27, 0  ;;  %p879_p5 = scmp.lt.s32.totalorder %s1154_s27, 2 }
  0x1c   : > { %s1294_s16 = scalar_select %p30_p12, %s1150_s26, %s32_s15  }
  0x1d   : > { %p1298_p3 = por %p195_p2, %p39_p13  ;;  %s270_s19 = sand.u32 1, %s1150_s26  }
  0x1e   : > { %s821_s20 = sshll.u32 %s1154_s27, 3  ;;  %p41_p7 = por %p40_p0, %p39_p13 }
  0x1f   : > { %s820_s18 = sshll.u32 %s270_s19, 3  ;;  %s278_s23 = scalar_lea.hbm %s1432_s0, %s821_s20 }
  0x20   : > { %s280_s29 = sshll.u32 %s278_s23, 4  ;;  %s274_s9 = scalar_lea.vmem [#allocation3], %s820_s18  ;;  %s281_s29 = int_to_ptr.hbm [resolvable:$true] %s280_s29 }
  0x21   : > { %s282_s10 = sshll.u32 %s274_s9, 4  ;;  %p1308_p10 = pnand %p879_p5, %p41_p7  ;;  %s283_s10 = int_to_ptr.vmem [resolvable:$true] %s282_s10 }
  0x22   : > { %s271_s14 = scalar_lea.sflag [#allocation4], %s270_s19  ;;  %s1050_s15 = sshra.s32 %s281_s29, 4  ;;  %s1051_s15 = int_to_ptr.hbm [resolvable:$true] %s1050_s15 }
  0x23   : > { %s1052_s1 = scalar_lea.hbm %s1051_s15, 8  ;;  %p1054_p11 = pneg %p1308_p10 }
  0x24   : > { %p1053_p2 = scmp.ne.s32.totalorder %s1051_s15, %s1052_s1  ;;  %s1057_s18 = scalar_lea.hbm %s1432_s0, 16 }
  0x25   : > { %p1058_p0 = scmp.lt.s32.totalorder %s1051_s15, %s1432_s0  ;;  %p1059_p5 = scmp.lt.s32.totalorder %s1057_s18, %s1052_s1 }
  0x26   : > { %p1055_p12 = pnand %p1054_p11, %p1053_p2 }
  0x27   : > { %p1060_p7 = por %p1059_p5, %p1058_p0 }
  0x28   : > { %p1056_p13 = pneg %p1055_p12 }
  0x2a   : > { %p1061_p9 = pnand %p1060_p7, %p1056_p13 }
  0x2c   : > { %1064 = shalt.err (!%p1061_p9)
}
  0x2d   : > { %871 = dma.hbm_to_vmem [thread:$0]  (!%p1308_p10), %s281_s29, 128, %s283_s10, %s271_s14  }
  0x2e   : > { %291 = sbr.rel (%p1259_p8) target bundleno = 1519 (0x5ef), region = 48  ;;  %s1325_s19 = sand.u32 (!%p1259_p8), 1, %s1146_s25  }
  0x2f   : > { %s823_s9 = sshll.u32 (!%p1259_p8), %s1325_s19, 3  ;;  %s294_s20 = scalar_lea.sflag (!%p1259_p8), [#allocation4], %s1325_s19 }
  0x30   : > { %s297_s1 = scalar_lea.vmem (!%p1259_p8), [#allocation3], %s823_s9 }
  0x33   : > { %1125 = dma.done.wait (%p1246_p4), %s294_s20, 128  }
  0x34   : > { %1127 = vsyncadd (%p1246_p4), %s294_s20, 4294967168 }
  0x35   : > { %1129 = dma.done.wait (%p46_p1), [#allocation7], 528  }
  0x36   : > { %1131 = vsyncadd (%p46_p1), [#allocation7], 4294966768 }
  0x37   : > { %1133 = dma.done.wait (%p46_p1), [#allocation10], 512  }
  0x38   : > { %1135 = vsyncadd (%p46_p1), [#allocation10], 4294966784  ;;  %vm346_vm0 = vcmask 261120   ;;  %v1343_v0 = vld [vmem:[%s297_s1] sm:$0xff]  ;;  %v1161_v2 = vmov 32.0   ;;  %v386_v17 = vld [vmem:[#allocation8] sm:$0xff] }
  0x39   : > { %v347_v1 = vsel %vm346_vm0, %v1343_v0, 0.0  ;;  %940 = vrcp.f32 %v1161_v2  ;;  %v389_v14 = vld [vmem:[#allocation8 + $0x18] sm:$0xff]  ;;  %v388_v15 = vld [vmem:[#allocation8 + $0x10] sm:$0xff]  ;;  %v387_v16 = vld [vmem:[#allocation8 + $0x8] sm:$0xff]  ;;  %s1162_s13 = smov 88   ;;  %s1163_s14 = smov 96  }
  0x3a   : > { %348 = vadd.xlane.f32.xlu0 %v347_v1  ;;  %409 = vmatpush.msra.mxu0 %v389_v14  ;;  %v936_v27 = vld [vmem:[#allocation6] ss:$0 sm:$0xff]  ;;  %v937_v30 = vld [vmem:[%s1434_s2] ss:$0 sm:$0xff]  ;;  %s1164_s15 = smov 120   ;;  %s1165_s21 = smov 64  }
  0x3b   : > { %v938_v33 = vld [vmem:[%s1436_s4] ss:$0 sm:$0xff]  ;;  %s1166_s18 = smov 104   ;;  %s1167_s22 = smov 80   ;;  %vm423_vm5 = vcmask 64512   ;;  %vm459_vm6 = vcmask 1043456  }
  0x3c   : > { %410 = vmatpush.msra.mxu0 %v388_v15  ;;  %s1168_s23 = smov 56   ;;  %s1169_s20 = smov 72   ;;  %vm539_vm7 = vcmask 130112   ;;  %vm601_vm8 = vcmask 195712   ;;  %vm663_vm9 = vcmask 261312  }
  0x3d   : > { %s1170_s1 = smov 112   ;;  %s1171_s30 = smov 40  }
  0x3e   : > { %411 = vmatpush.msra.mxu0 %v387_v16  ;;  %s1172_s12 = smov 48   ;;  %s1173_s29 = smov 8  }
  0x3f   : > { %v941_v3 = vpop.eup %940  ;;  %s1174_s10 = smov 24  }
  0x40   : > { %v351_v4 = vmul.f32 32.0, %v941_v3  ;;  %vm355_vm1 = vweird.f32 %v941_v3  ;;  %412 = vmatpush.msra.mxu0 %v386_v17 }
  0x42   : > { %v352_v5 = vsub.f32 1.0, %v351_v4 }
  0x44   : > { %v353_v6 = vmul.f32 %v941_v3, %v352_v5 }
  0x46   : > { %v354_v7 = vadd.f32 %v941_v3, %v353_v6 }
  0x48   : > { %v356_v8 = vsel %vm355_vm1, %v941_v3, %v354_v7 }
  0xad   : > { %v349_v9 = vpop.xlane.xlu0 %348 }
  0xae   : > { %v357_v10 = vmul.f32 %v356_v8, %v349_v9 }
  0xb0   : > { %v358_v11 = vsub.f32 %v1343_v0, %v357_v10 }
  0xb2   : > { %v359_v12 = vmul.f32 %v358_v11, %v358_v11 }
  0xb4   : > { %v360_v13 = vsel %vm346_vm0, %v359_v12, 0.0 }
  0xb5   : > { %361 = vadd.xlane.f32.xlu0 %v360_v13 }
 0x128   : > { %v362_v18 = vpop.xlane.xlu0 %361 }
 0x129   : > { %v363_v19 = vmul.f32 %v362_v18, %v356_v8 }
 0x12b   : > { %v364_v20 = vadd.f32 1e-05, %v363_v19 }
 0x12d   : > { %942 = vrsqrt.f32 %v364_v20  ;;  %vm371_vm3 = vweird.f32 %v364_v20 }
 0x133   : > { %v943_v21 = vpop.eup %942 }
 0x134   : > { %v366_v22 = vmul.f32 %v943_v21, %v364_v20  ;;  %vm372_vm2 = vweird.f32 %v943_v21 }
 0x135   : > { %vm373_vm4 = vmor %vm371_vm3, %vm372_vm2 }
 0x136   : > { %v367_v23 = vmul.f32 %v943_v21, %v366_v22 }
 0x138   : > { %v368_v24 = vmul.f32 0.5, %v367_v23 }
 0x13a   : > { %v369_v25 = vsub.f32 1.5, %v368_v24 }
 0x13c   : > { %v370_v26 = vmul.f32 %v943_v21, %v369_v25 }
 0x13e   : > { %v374_v28 = vsel %vm373_vm4, %v943_v21, %v370_v26 }
 0x13f   : > { %v375_v29 = vmul.f32 %v374_v28, %v358_v11 }
 0x141   : > { %v380_v31 = vmul.f32 %v936_v27, %v375_v29 }
 0x143   : > { %v385_v32 = vadd.f32 %v937_v30, %v380_v31 }
 0x145   : > { %828 = vmatmul.msk.f32.vlgmr.msra.gmra.mxu0 %vm346_vm0, %v385_v32 }
 0x1c2   : > { %v414_v34 = vpop.f32.mrf.mxu0 }
 0x1c3   : > { %v415_v35 = vadd.f32 %v938_v33, %v414_v34 }
 0x1c5   : > { %v417_v36 = vmul.f32 0.35355338, %v415_v35  ;;  %v1356_v37 = vpack.c.bf16 %v415_v35, %v415_v35 }
 0x1c7   : > { %v418_v38 = vpack.c.bf16 %v417_v36, %v417_v36  ;;  %481 = vrot.lane.b32.xlu2 %v1356_v37, %s1162_s13  ;;  %421 = vrot.lane.b32.xlu1 %v1356_v37, %s1163_s14  ;;  %s1175_s13 = smov 16   ;;  %s839_s14 = sshll.u32 %s1237_s28, 3 }
 0x1c8   : > { %s700_s28 = scalar_lea.sflag [#allocation5], %s1325_s19 }
 0x1c9   : > { %479 = vrot.lane.b32.xlu0 %v418_v38, %s1164_s15 }
 0x1cf   : > { %454 = vrot.lane.b32.xlu2 %v1356_v37, %s1165_s21 }
 0x1d1   : > { %603 = vrot.lane.b32.xlu0 %v418_v38, %s1166_s18 }
 0x1d7   : > { %543 = vrot.lane.b32.xlu2 %v1356_v37, %s1167_s22 }
 0x1d9   : > { %513 = vrot.lane.b32.xlu0 %v1356_v37, %s1168_s23  ;;  %s710_s23 = scalar_lea.hbm %s1439_s7, %s839_s14 }
 0x1df   : > { %605 = vrot.lane.b32.xlu2 %v1356_v37, %s1169_s20  ;;  %s343_s20 = scalar_lea.vmem [#allocation11], %s823_s9  ;;  %s1100_s9 = scalar_lea.hbm %s1439_s7, 16 }
 0x1e7   : > { %541 = vrot.lane.b32.xlu2 %v418_v38, %s1170_s1  ;;  %s712_s1 = sshll.u32 %s343_s20, 4  ;;  %s713_s1 = int_to_ptr.vmem [resolvable:$true] %s712_s1 }
 0x221   : > { %v482_v39 = vpop.permute.xlu2 %481 }
 0x222   : > { %v487_v40 = vsel %vm423_vm5, %v482_v39, 0 }
 0x223   : > { %496 = vmatpush.bf16.xpose.msra.mxu3 %v487_v40 }
 0x229   : > { %v455_v41 = vpop.permute.xlu2 %454 }
 0x22a   : > { %v461_v42 = vsel %vm459_vm6, %v455_v41, 0 }
 0x22b   : > { %470 = vmatpush.bf16.msra.mxu2 %v461_v42 }
 0x231   : > { %v544_v43 = vpop.permute.xlu2 %543 }
 0x232   : > { %v549_v44 = vsel %vm423_vm5, %v544_v43, 0 }
 0x233   : > { %558 = vmatpush.bf16.xpose.msrb.mxu2 %v549_v44 }
 0x239   : > { %v606_v45 = vpop.permute.xlu2 %605  ;;  %v422_v46 = vpop.permute.xlu1 %421 }
 0x23a   : > { %v428_v47 = vsel %vm423_vm5, %v422_v46, 0  ;;  %v611_v48 = vsel %vm423_vm5, %v606_v45, 0 }
 0x23b   : > { %437 = vmatpush.bf16.xpose.msra.mxu1 %v428_v47  ;;  %620 = vmatpush.bf16.xpose.msrb.mxu3 %v611_v48  ;;  %v480_v49 = vpop.permute.xlu0 %479 }
 0x23c   : > { %831 = vmatmul.msk.bf16.vlgmr.msra.gmra.mxu3 %vm423_vm5, %v480_v49 }
 0x241   : > { %v542_v62 = vpop.permute.xlu2 %541 }
 0x242   : > { %829 = vmatmul.msk.bf16.vlgmr.msra.gmra.mxu1 %vm423_vm5, %v418_v38 }
 0x243   : > { %v604_v50 = vpop.permute.xlu0 %603 }
 0x24b   : > { %v514_v51 = vpop.permute.xlu0 %513 }
 0x24c   : > { %835 = vmatmul.msk.bf16.vlgmr.msrb.gmra.mxu3 %vm423_vm5, %v604_v50  ;;  %v519_v52 = vsel %vm459_vm6, %v514_v51, 0 }
 0x24d   : > { %528 = vmatpush.bf16.msrb.mxu0 %v519_v52  ;;  %v669_v52 = vld [vmem:[#allocation9 + $0x18] sm:$0xff] }
 0x2bf   : > { %v439_v53 = vpop.f32.mrf.mxu1  ;;  %v498_v54 = vpop.f32.mrf.mxu3 }
 0x2c0   : > { %v502_v55 = vsel %vm423_vm5, %v498_v54, -inf  ;;  %v443_v56 = vsel %vm423_vm5, %v439_v53, -inf }
 0x2c1   : > { %503 = vmax.xlane.f32.xlu2 %v502_v55  ;;  %444 = vmax.xlane.f32.xlu1 %v443_v56  ;;  %v666_v55 = vld [vmem:[#allocation9] sm:$0xff] }
 0x2c7   : > { %v441_v57 = vpop.f32.mrf.mxu1  ;;  %v500_v58 = vpop.f32.mrf.mxu3 }
 0x2cf   : > { %v622_v59 = vpop.f32.mrf.mxu3 }
 0x2d0   : > { %v626_v60 = vsel %vm423_vm5, %v622_v59, -inf }
 0x2d1   : > { %627 = vmax.xlane.f32.xlu0 %v626_v60 }
 0x2d7   : > { %v624_v61 = vpop.f32.mrf.mxu3 }
 0x2d9   : > { %637 = vrot.lane.b32.xlu2 %v1356_v37, %s1171_s30  ;;  %s714_s30 = sshll.u32 %s710_s23, 4  ;;  %s715_s30 = int_to_ptr.hbm [resolvable:$true] %s714_s30 }
 0x334   : > { %v504_v63 = vpop.xlane.xlu2 %503  ;;  %v445_v1 = vpop.xlane.xlu1 %444 }
 0x335   : > { %v505_v2 = vsub.f32 %v498_v54, %v504_v63  ;;  %v446_v3 = vsub.f32 %v439_v53, %v445_v1  ;;  %v668_v53 = vld [vmem:[#allocation9 + $0x10] sm:$0xff]  ;;  %v667_v54 = vld [vmem:[#allocation9 + $0x8] sm:$0xff] }
 0x337   : > { %v506_v4 = vmul.f32 1.442695, %v505_v2  ;;  %v447_v5 = vmul.f32 1.442695, %v446_v3 }
 0x339   : > { %944 = vpow2.f32 %v506_v4 }
 0x33a   : > { %946 = vpow2.f32 %v447_v5 }
 0x33c   : > { %v638_v6 = vpop.permute.xlu2 %637 }
 0x33d   : > { %v643_v7 = vsel %vm459_vm6, %v638_v6, 0 }
 0x33e   : > { %652 = vmatpush.bf16.msra.mxu0 %v643_v7 }
 0x33f   : > { %v945_v8 = vpop.eup %944 }
 0x340   : > { %v947_v9 = vpop.eup %946  ;;  %v512_v10 = vpack.c.bf16 %v945_v8, %v945_v8  ;;  %v508_v31 = vsel %vm423_vm5, %v945_v8, 0.0 }
 0x341   : > { %v449_v11 = vsel %vm423_vm5, %v947_v9, 0.0  ;;  %v453_v12 = vpack.c.bf16 %v947_v9, %v947_v9 }
 0x342   : > { %450 = vadd.xlane.f32.xlu2 %v449_v11  ;;  %832 = vmatmul.msk.bf16.vlgmr.msrb.gmra.mxu0 %vm423_vm5, %v512_v10 }
 0x343   : > { %830 = vmatmul.msk.bf16.vlgmr.msra.gmra.mxu2 %vm423_vm5, %v453_v12 }
 0x344   : > { %v628_v13 = vpop.xlane.xlu0 %627  ;;  %689 = vmatpush.msra.mxu2 %v669_v52 }
 0x345   : > { %v629_v14 = vsub.f32 %v622_v59, %v628_v13  ;;  %v939_v59 = vld [vmem:[%s1438_s6] ss:$0 sm:$0xff] }
 0x346   : > { %690 = vmatpush.msra.mxu2 %v668_v53 }
 0x347   : > { %v630_v15 = vmul.f32 1.442695, %v629_v14 }
 0x348   : > { %691 = vmatpush.msra.mxu2 %v667_v54 }
 0x349   : > { %948 = vpow2.f32 %v630_v15 }
 0x34a   : > { %692 = vmatpush.msra.mxu2 %v666_v55 }
 0x34f   : > { %v949_v16 = vpop.eup %948 }
 0x350   : > { %v636_v17 = vpack.c.bf16 %v949_v16, %v949_v16  ;;  %v632_v18 = vsel %vm423_vm5, %v949_v16, 0.0 }
 0x351   : > { %633 = vadd.xlane.f32.xlu0 %v632_v18 }
 0x352   : > { %836 = vmatmul.msk.bf16.vlgmr.msra.gmra.mxu0 %vm423_vm5, %v636_v17 }
 0x353   : > { %833 = vmatmul.msk.bf16.vlgmr.msrb.gmra.mxu2 %vm423_vm5, %v542_v62 }
 0x3b5   : > { %v451_v19 = vpop.xlane.xlu2 %450 }
 0x3b6   : > { %950 = vrcp.f32 %v451_v19 }
 0x3bc   : > { %v951_v21 = vpop.eup %950 }
 0x3bf   : > { %v530_v20 = vpop.f32.mrf.mxu0 }
 0x3c6   : > { %v472_v22 = vpop.f32.mrf.mxu2 }
 0x3c7   : > { %v476_v23 = vmul.f32 %v951_v21, %v472_v22  ;;  %v532_v24 = vpop.f32.mrf.mxu0 }
 0x3c9   : > { %477 = vst.msk [vmem:[#allocation2] sm:$0xff] %vm423_vm5, %v476_v23 }
 0x3ce   : > { %v474_v25 = vpop.f32.mrf.mxu2 }
 0x3cf   : > { %v654_v26 = vpop.f32.mrf.mxu0 }
 0x3d6   : > { %v560_v27 = vpop.f32.mrf.mxu2 }
 0x3d7   : > { %v656_v28 = vpop.f32.mrf.mxu0  ;;  %v564_v29 = vsel %vm423_vm5, %v560_v27, -inf }
 0x3d8   : > { %565 = vmax.xlane.f32.xlu1 %v564_v29 }
 0x3de   : > { %v562_v30 = vpop.f32.mrf.mxu2 }
 0x3f1   : > { %575 = vrot.lane.b32.xlu1 %v1356_v37, %s1172_s12  ;;  %v634_v37 = vpop.xlane.xlu0 %633  ;;  %s1094_s12 = sshra.s32 %s715_s30, 4  ;;  %s1095_s12 = int_to_ptr.hbm [resolvable:$true] %s1094_s12 }
 0x3f2   : > { %p1101_p9 = scmp.lt.s32.totalorder %s1095_s12, %s1439_s7 }
 0x41b   : > { %509 = vadd.xlane.f32.xlu1 %v508_v31 }
 0x44b   : > { %v566_v32 = vpop.xlane.xlu1 %565 }
 0x44c   : > { %v567_v33 = vsub.f32 %v560_v27, %v566_v32 }
 0x44e   : > { %v568_v34 = vmul.f32 1.442695, %v567_v33 }
 0x450   : > { %952 = vpow2.f32 %v568_v34 }
 0x456   : > { %v953_v35 = vpop.eup %952 }
 0x457   : > { %v570_v36 = vsel %vm423_vm5, %v953_v35, 0.0  ;;  %v574_v40 = vpack.c.bf16 %v953_v35, %v953_v35 }
 0x458   : > { %571 = vadd.xlane.f32.xlu0 %v570_v36 }
 0x463   : > { %v576_v38 = vpop.permute.xlu1 %575 }
 0x464   : > { %v581_v39 = vsel %vm459_vm6, %v576_v38, 0 }
 0x465   : > { %590 = vmatpush.bf16.msrb.mxu1 %v581_v39 }
 0x468   : > { %834 = vmatmul.msk.bf16.vlgmr.msrb.gmra.mxu1 %vm423_vm5, %v574_v40 }
 0x48e   : > { %v510_v41 = vpop.xlane.xlu1 %509 }
 0x48f   : > { %954 = vrcp.f32 %v510_v41 }
 0x490   : > { %956 = vrcp.f32 %v634_v37 }
 0x495   : > { %v955_v42 = vpop.eup %954 }
 0x496   : > { %v534_v43 = vmul.f32 %v955_v42, %v530_v20  ;;  %v957_v44 = vpop.eup %956 }
 0x497   : > { %v658_v45 = vmul.f32 %v957_v44, %v654_v26 }
 0x498   : > { %536 = vrot.lane.b32.xlu0 %v534_v43, %s1173_s29  ;;  %s1096_s29 = scalar_lea.hbm %s1095_s12, 8 }
 0x499   : > { %p1097_p1 = scmp.ne.s32.totalorder %s1095_s12, %s1096_s29  ;;  %p1102_p10 = scmp.lt.s32.totalorder %s1100_s9, %s1096_s29 }
 0x49b   : > { %p1098_p4 = pnand %p1097_p1, %p1298_p3  ;;  %p1103_p2 = por %p1102_p10, %p1101_p9 }
 0x49d   : > { %p1099_p8 = pneg %p1098_p4 }
 0x49f   : > { %p1104_p11 = pnand %p1103_p2, %p1099_p8 }
 0x4a0   : > { %660 = vrot.lane.b32.xlu0 %v658_v45, %s1174_s10 }
 0x4cb   : > { %v572_v46 = vpop.xlane.xlu0 %571 }
 0x4cc   : > { %958 = vrcp.f32 %v572_v46 }
 0x4d2   : > { %v959_v47 = vpop.eup %958 }
 0x4e5   : > { %v592_v48 = vpop.f32.mrf.mxu1 }
 0x4e6   : > { %v596_v49 = vmul.f32 %v959_v47, %v592_v48 }
 0x4e8   : > { %598 = vrot.lane.b32.xlu1 %v596_v49, %s1175_s13 }
 0x4ed   : > { %v594_v50 = vpop.f32.mrf.mxu1 }
 0x50a   : > { %v537_v51 = vpop.permute.xlu0 %536 }
 0x50b   : > { %540 = vst.msk [vmem:[#allocation2] sm:$0xff] %vm539_vm7, %v537_v51 }
 0x512   : > { %v661_v57 = vpop.permute.xlu0 %660 }
 0x55a   : > { %v599_v56 = vpop.permute.xlu1 %598 }
 0x55b   : > { %602 = vst.msk [vmem:[#allocation2] sm:$0xff] %vm601_vm8, %v599_v56 }
 0x55c   : > { %664 = vst.msk [vmem:[#allocation2] sm:$0xff] %vm663_vm9, %v661_v57 }
 0x563   : > { %v665_v58 = vld [vmem:[#allocation2] sm:$0xff] }
 0x564   : > { %837 = vmatmul.msk.f32.vlgmr.msra.gmra.mxu2 %vm346_vm0, %v665_v58 }
 0x5e7   : > { %v694_v60 = vpop.f32.mrf.mxu2 }
 0x5e8   : > { %v695_v61 = vadd.f32 %v939_v59, %v694_v60 }
 0x5ea   : > { %v697_v62 = vadd.f32 %v695_v61, %v1343_v0 }
 0x5ec   : > { %698 = vst.msk [vmem:[%s343_s20] sm:$0xff] %vm346_vm0, %v697_v62 }
 0x5ed   : > { %1107 = shalt.err (!%p1104_p11)
}
 0x5ee   : > { %856 = dma.vmem_to_hbm [thread:$0]  (%p1298_p3), %s713_s1, 128, %s715_s30, %s700_s28  }
 0x5ef PF: > { %s726_s19 = sand.u32 1, %s1142_s24   ;;  %p1448_p12 = scmp.ge.s32.totalorder %s1154_s27, 2 }
 0x5f0   : > { %s727_s21 = scalar_lea.sflag [#allocation5], %s726_s19 }
 0x5f1   : > { %p873_p13 = pnand %p1448_p12, %p1251_p6 }
 0x5f3   : > { %p874_p0 = pneg %p873_p13 }
 0x5f5   : > { %1137 = dma.done.wait (%p874_p0), %s727_s21, 128  }
 0x5f6   : > { %1139 = vsyncadd (%p874_p0), %s727_s21, 4294967168  ;;  %p22_p5 = scmp.ge.s32.totalorder %s1285_s11, 4   ;;  %s1449_s24 = smov %s1146_s25 }
 0x5f7   : > { %s1450_s25 = smov %s1150_s26  ;;  %s1451_s26 = smov %s1294_s16 }
 0x5f8   : > { %s1452_s27 = smov %s1285_s11  ;;  %24 = sbr.rel (!%p22_p5) target bundleno = 9 (0x9), region = 105 }
 0x5fd   :  { %733 = vsyncpa [#allocation4], 1 }
 0x5fe   :  { %735 = vsyncpa [#allocation4 + $0x1], 1 }
 0x5ff   :  { %736 = vsyncpa [#allocation7], 1 }
 0x600   :  { %737 = vsyncpa [#allocation10], 1 }
 0x601   :  { %738 = vsyncpa [#allocation5], 1 }
 0x602   :  { %740 = vsyncpa [#allocation5 + $0x1], 1 }

</bundles_post_ra>
